<compile_context>
chip_gen: v7x
topology: tpu7x:2x2x1
jax: 0.10.0
libtpu: 0.0.40
codegen_flags: <defaults>
</compile_context>

<pallas_src>
import functools

import jax
import jax.numpy as jnp
from jax.experimental import pallas as pl
from jax.experimental.pallas import tpu as pltpu


def _lstm_step_kernel(len_ref, xproj_ref, whh_ref, out_ref, h_ref, c_ref):
    # Grid = (batch_tiles, T); T varies fastest, so each batch tile runs its
    # full recurrence before the next tile starts.  h/c persist in VMEM
    # scratch across the T axis.
    #   len_ref   : (TB, 1)        int32  -- true sequence lengths (0 on pad rows)
    #   xproj_ref : (1, TB, 4Hp)   f32/bf16 -- x @ w_ih.T + (b_ih+b_hh), step t
    #   whh_ref   : (Hp, 4Hp)      f32/bf16 -- hidden->gates weights (transposed)
    #   out_ref   : (TB, Hp)       f32    -- final hidden state per sequence
    t = pl.program_id(1)

    @pl.when(t == 0)
    def _():
        h_ref[...] = jnp.zeros_like(h_ref)
        c_ref[...] = jnp.zeros_like(c_ref)

    h = h_ref[...]
    c = c_ref[...]
    H = h.shape[-1]

    # Only the small (TB, Hp) x (Hp, 4Hp) recurrent matmul is on the serial chain.
    gates = xproj_ref[0].astype(jnp.float32) + jnp.dot(
        h.astype(whh_ref.dtype), whh_ref[...], preferred_element_type=jnp.float32)

    # Hp is a multiple of 128, so every gate slice is lane-tile aligned.
    i_g = jax.nn.sigmoid(gates[:, 0 * H:1 * H])
    f_g = jax.nn.sigmoid(gates[:, 1 * H:2 * H])
    g_g = jnp.tanh(gates[:, 2 * H:3 * H])
    o_g = jax.nn.sigmoid(gates[:, 3 * H:4 * H])

    c_new = f_g * c + i_g * g_g
    h_new = o_g * jnp.tanh(c_new)

    # Packed-sequence semantics: freeze h once t >= length[b].  `keep` is
    # monotone non-increasing in t, so c needs no masking -- once h freezes it
    # never reads c again (saves one (TB, Hp) VPU select per step).
    keep = t < len_ref[...]                       # (TB, 1) broadcasts over Hp
    h_new = jnp.where(keep, h_new, h)

    h_ref[...] = h_new
    c_ref[...] = c_new

    @pl.when(t == pl.num_programs(1) - 1)
    def _():
        out_ref[...] = h_new


@functools.partial(jax.jit, static_argnames=("compute_dtype",))
def lstm_forward(tokens, emb_table, w_ih, w_hh, b_ih, b_hh,
                 compute_dtype=jnp.float32):
    """tokens: (B, T) int32.  Returns (B, H) f32, matching LSTM.forward.

    compute_dtype controls the MXU-operand dtype of xproj/whh (f32 or bf16);
    accumulation, h/c and all elementwise math stay f32.
    """
    B, T = tokens.shape
    H = w_hh.shape[1]
    E = emb_table.shape[1]
    compute_dtype = jnp.dtype(compute_dtype)
    f32 = jnp.float32

    # ---- padding ---------------------------------------------------------
    # Lane-pad H to a multiple of 128; padded gate columns get zero weights
    # and zero bias, so padded h/c lanes stay exactly 0 and are sliced off.
    H_pad = ((H + 127) // 128) * 128
    G_pad = 4 * H_pad
    # Sublane-pad the batch: 16 rows for a bf16 matmul LHS, 8 for f32.
    sub = 16 if compute_dtype == jnp.dtype(jnp.bfloat16) else 8
    B_pad = max(sub, ((B + sub - 1) // sub) * sub)

    tokens_p = jnp.zeros((B_pad, T), tokens.dtype).at[:B, :].set(tokens)

    # lengths = first index of a 0 (pad) token; T if the row has no padding.
    # Padded batch rows are all-pad -> length 0 -> their state never updates.
    padded = jnp.concatenate(
        [tokens_p, jnp.zeros((B_pad, 1), tokens_p.dtype)], axis=1)
    lengths = jnp.argmin(padded, axis=1).astype(jnp.int32)[:, None]   # (B_pad, 1)

    # ---- hoist the E=300-deep input projection out of the recurrence ------
    w_ih_p = jnp.zeros((4, H_pad, E), f32).at[:, :H, :].set(
        w_ih.reshape(4, H, E).astype(f32)).reshape(G_pad, E)
    bias_p = jnp.zeros((4, H_pad), f32).at[:, :H].set(
        (b_ih + b_hh).reshape(4, H).astype(f32)).reshape(G_pad)
    proj_table = (jnp.dot(emb_table.astype(f32), w_ih_p.T,
                          preferred_element_type=f32)
                  + bias_p[None, :]).astype(compute_dtype)            # (V, 4Hp)

    # Time-major gather: transpose the cheap (B, T) int32 token matrix, not
    # the (T, B, 4H) activation tensor.
    xproj = jnp.take(proj_table, tokens_p.T, axis=0)                  # (T, B_pad, 4Hp)
    # TODO(synk): at production shapes (H=2048, large B/T) skip materializing
    # xproj in HBM entirely -- scalar-prefetch the (T, B) token ids and gather
    # proj_table rows per time step inside the kernel.

    w_hh_p = jnp.zeros((4, H_pad, H_pad), f32).at[:, :H, :H].set(
        w_hh.reshape(4, H, H).astype(f32)).reshape(G_pad, H_pad)
    whh_t = jnp.transpose(w_hh_p).astype(compute_dtype)               # (Hp, 4Hp)

    # ---- grid / specs ------------------------------------------------------
    TB = 256 if (B_pad % 256 == 0) else B_pad      # batch tile ("parallel" axis)
    num_b_tiles = B_pad // TB

    itemsize = compute_dtype.itemsize
    vmem_need = (H_pad * G_pad * itemsize          # resident whh
                 + 2 * TB * G_pad * itemsize       # double-buffered xproj block
                 + 2 * TB * H_pad * 4              # h/c scratch
                 + 2 * TB * H_pad * 4              # output block
                 + 2 * TB * 128 * 4)               # lengths block (padded)
    vmem_limit = min(max(int(1.5 * vmem_need) + (2 << 20), 16 << 20), 64 << 20)

    out = pl.pallas_call(
        _lstm_step_kernel,
        out_shape=jax.ShapeDtypeStruct((B_pad, H_pad), jnp.float32),
        grid_spec=pltpu.PrefetchScalarGridSpec(
            num_scalar_prefetch=0,
            grid=(num_b_tiles, T),
            in_specs=[
                pl.BlockSpec((TB, 1), lambda b, t: (b, 0)),             # lengths
                pl.BlockSpec((1, TB, G_pad), lambda b, t: (t, b, 0)),   # xproj step
                pl.BlockSpec((H_pad, G_pad), lambda b, t: (0, 0)),      # whh (resident)
            ],
            out_specs=pl.BlockSpec((TB, H_pad), lambda b, t: (b, 0)),
            scratch_shapes=[pltpu.VMEM((TB, H_pad), jnp.float32),       # h
                            pltpu.VMEM((TB, H_pad), jnp.float32)]),     # c
        compiler_params=pltpu.CompilerParams(
            dimension_semantics=("parallel", "arbitrary"),
            vmem_limit_bytes=vmem_limit),
    )(lengths, xproj, whh_t)
    return out[:B, :H]


def ref_forward(tokens, emb_table, w_ih, w_hh, b_ih, b_hh):
    """Pure-JAX f32 reference with identical semantics."""
    B, T = tokens.shape
    H = w_hh.shape[1]
    padded = jnp.concatenate([tokens, jnp.zeros((B, 1), tokens.dtype)], axis=1)
    lengths = jnp.argmin(padded, axis=1)
    x = jnp.take(emb_table, tokens, axis=0)
    h = jnp.zeros((B, H), jnp.float32)
    c = jnp.zeros((B, H), jnp.float32)
    for t in range(T):
        gates = x[:, t, :] @ w_ih.T + h @ w_hh.T + b_ih + b_hh
        i = jax.nn.sigmoid(gates[:, :H])
        f = jax.nn.sigmoid(gates[:, H:2 * H])
        g = jnp.tanh(gates[:, 2 * H:3 * H])
        o = jax.nn.sigmoid(gates[:, 3 * H:])
        c_new = f * c + i * g
        h_new = o * jnp.tanh(c_new)
        m = (t < lengths)[:, None]
        h = jnp.where(m, h_new, h)
        c = jnp.where(m, c_new, c)
    return h


if __name__ == "__main__":
    # Small, deterministic shapes consistent with the module.
    B, T = 2, 8
    V, E, H = 50, 300, 32   # vocab, GloVe embed dim (fixed at 300), hidden dim

    key = jax.random.PRNGKey(0)
    k_emb, k_tok, k_wih, k_whh, k_bih, k_bhh = jax.random.split(key, 6)

    # Embedding table: row 0 is the pad vector (zeros), like W_pad in the module.
    emb_table = 0.1 * jax.random.normal(k_emb, (V, E), jnp.float32)
    emb_table = emb_table.at[0].set(0.0)

    # LSTM parameters (PyTorch layout: (4H, E), (4H, H), (4H,), gate order i,f,g,o).
    w_ih = 0.1 * jax.random.normal(k_wih, (4 * H, E), jnp.float32)
    w_hh = 0.1 * jax.random.normal(k_whh, (4 * H, H), jnp.float32)
    b_ih = 0.1 * jax.random.normal(k_bih, (4 * H,), jnp.float32)
    b_hh = 0.1 * jax.random.normal(k_bhh, (4 * H,), jnp.float32)

    # Token ids in [1, V); zero-out a tail to create padding (row 1 has length 5).
    tokens = jax.random.randint(k_tok, (B, T), 1, V, jnp.int32)
    tokens = tokens.at[1, 5:].set(0)

    ref = ref_forward(tokens, emb_table, w_ih, w_hh, b_ih, b_hh)

    # f32 MXU operands: tight tolerance vs. the f32 reference.
    out_f32 = lstm_forward(tokens, emb_table, w_ih, w_hh, b_ih, b_hh,
                           compute_dtype=jnp.float32)
    out_f32 = jax.block_until_ready(out_f32)
    assert out_f32.shape == (B, H)
    assert jnp.allclose(out_f32, ref, atol=1e-5, rtol=1e-5), \
        "Pallas LSTM (f32) mismatch vs reference"

    # bf16 MXU operands (production path for v5e/v6e/v7x): loose tolerance.
    out_bf16 = lstm_forward(tokens, emb_table, w_ih, w_hh, b_ih, b_hh,
                            compute_dtype=jnp.bfloat16)
    out_bf16 = jax.block_until_ready(out_bf16)
    assert out_bf16.shape == (B, H)
    assert jnp.allclose(out_bf16, ref, atol=5e-2), \
        "Pallas LSTM (bf16) mismatch vs reference"

    print("KERNEL_OK")
</pallas_src>

<mosaic_0001>
module attributes {stable_mosaic.version = 11 : i64} {
  func.func @_lstm_step_kernel(%arg0: i32, %arg1: i32, %arg2: memref<8x1xi32, #tpu.memory_space<vmem>>, %arg3: memref<1x8x512xf32, #tpu.memory_space<vmem>>, %arg4: memref<128x512xf32, #tpu.memory_space<vmem>>, %arg5: memref<8x128xf32, #tpu.memory_space<vmem>>, %arg6: memref<8x128xf32, #tpu.memory_space<vmem>>, %arg7: memref<8x128xf32, #tpu.memory_space<vmem>>) attributes {dimension_semantics = [#tpu.dimension_semantics<parallel>, #tpu.dimension_semantics<arbitrary>], iteration_bounds = array<i64: 1, 8>, scalar_prefetch = 0 : i64, scratch_operands = 2 : i64, tpu.core_type = #tpu.core_type<tc>, window_params = [{transform_indices = @transform_0, window_bounds = array<i64: 8, 1>}, {transform_indices = @transform_1, window_bounds = array<i64: 1, 8, 512>}, {pipeline_mode = #tpu.pipeline_mode<synchronous>, transform_indices = @transform_2, window_bounds = array<i64: 128, 512>}, {transform_indices = @transform_3, window_bounds = array<i64: 8, 128>}]} {
    %c0_i32 = arith.constant 0 : i32
    %0 = arith.cmpi eq, %arg1, %c0_i32 : i32
    %1 = arith.extui %0 : i1 to i32
    %c0_i32_0 = arith.constant 0 : i32
    %2 = arith.cmpi ne, %1, %c0_i32_0 : i32
    scf.if %2 {
      %cst_19 = arith.constant 0.000000e+00 : f32
      %46 = vector.broadcast %cst_19 : f32 to vector<8x128xf32>
      %c0_20 = arith.constant 0 : index
      %c0_21 = arith.constant 0 : index
      %47 = vector.load %arg6[%c0_20, %c0_21] : memref<8x128xf32, #tpu.memory_space<vmem>>, vector<8x128xf32>
      tpu.vector_store %arg6[%c0_20, %c0_21], %46 {strides = array<i32>} : memref<8x128xf32, #tpu.memory_space<vmem>>, vector<8x128xf32>,
      %cst_22 = arith.constant 0.000000e+00 : f32
      %48 = vector.broadcast %cst_22 : f32 to vector<8x128xf32>
      %c0_23 = arith.constant 0 : index
      %c0_24 = arith.constant 0 : index
      %49 = vector.load %arg7[%c0_23, %c0_24] : memref<8x128xf32, #tpu.memory_space<vmem>>, vector<8x128xf32>
      tpu.vector_store %arg7[%c0_23, %c0_24], %48 {strides = array<i32>} : memref<8x128xf32, #tpu.memory_space<vmem>>, vector<8x128xf32>,
    } else {
    }
    %c0 = arith.constant 0 : index
    %c0_1 = arith.constant 0 : index
    %3 = vector.load %arg6[%c0, %c0_1] : memref<8x128xf32, #tpu.memory_space<vmem>>, vector<8x128xf32>
    %c0_2 = arith.constant 0 : index
    %c0_3 = arith.constant 0 : index
    %4 = vector.load %arg7[%c0_2, %c0_3] : memref<8x128xf32, #tpu.memory_space<vmem>>, vector<8x128xf32>
    %c0_4 = arith.constant 0 : index
    %c0_5 = arith.constant 0 : index
    %c0_6 = arith.constant 0 : index
    %5 = vector.load %arg3[%c0_4, %c0_5, %c0_6] : memref<1x8x512xf32, #tpu.memory_space<vmem>>, vector<1x8x512xf32>
    %6 = vector.shape_cast %5 : vector<1x8x512xf32> to vector<8x512xf32>
    %c0_7 = arith.constant 0 : index
    %c0_8 = arith.constant 0 : index
    %7 = vector.load %arg4[%c0_7, %c0_8] : memref<128x512xf32, #tpu.memory_space<vmem>>, vector<128x512xf32>
    %cst = arith.constant dense<0.000000e+00> : vector<8x512xf32>
    %8 = tpu.matmul %3, %7, %cst {dimension_numbers = #tpu.dot_dimension_numbers<[1], [0], [0], [1], [0, 0, 1, 1], [], []>} : vector<8x128xf32>, vector<128x512xf32>, vector<8x512xf32> -> vector<8x512xf32>
    %9 = arith.addf %6, %8 : vector<8x512xf32>
    %10 = vector.extract_strided_slice %9 {offsets = [0, 0], sizes = [8, 128], strides = [1, 1]} : vector<8x512xf32> to vector<8x128xf32>
    %11 = arith.negf %10 : vector<8x128xf32>
    %12 = math.exp %11 : vector<8x128xf32>
    %cst_9 = arith.constant 1.000000e+00 : f32
    %13 = vector.broadcast %cst_9 : f32 to vector<8x128xf32>
    %14 = arith.addf %13, %12 : vector<8x128xf32>
    %15 = arith.divf %13, %14 : vector<8x128xf32>
    %16 = vector.extract_strided_slice %9 {offsets = [0, 128], sizes = [8, 128], strides = [1, 1]} : vector<8x512xf32> to vector<8x128xf32>
    %17 = arith.negf %16 : vector<8x128xf32>
    %18 = math.exp %17 : vector<8x128xf32>
    %cst_10 = arith.constant 1.000000e+00 : f32
    %19 = vector.broadcast %cst_10 : f32 to vector<8x128xf32>
    %20 = arith.addf %19, %18 : vector<8x128xf32>
    %21 = arith.divf %19, %20 : vector<8x128xf32>
    %22 = vector.extract_strided_slice %9 {offsets = [0, 256], sizes = [8, 128], strides = [1, 1]} : vector<8x512xf32> to vector<8x128xf32>
    %23 = math.tanh %22 : vector<8x128xf32>
    %24 = vector.extract_strided_slice %9 {offsets = [0, 384], sizes = [8, 128], strides = [1, 1]} : vector<8x512xf32> to vector<8x128xf32>
    %25 = arith.negf %24 : vector<8x128xf32>
    %26 = math.exp %25 : vector<8x128xf32>
    %cst_11 = arith.constant 1.000000e+00 : f32
    %27 = vector.broadcast %cst_11 : f32 to vector<8x128xf32>
    %28 = arith.addf %27, %26 : vector<8x128xf32>
    %29 = arith.divf %27, %28 : vector<8x128xf32>
    %30 = arith.mulf %21, %4 : vector<8x128xf32>
    %31 = arith.mulf %15, %23 : vector<8x128xf32>
    %32 = arith.addf %30, %31 : vector<8x128xf32>
    %33 = math.tanh %32 : vector<8x128xf32>
    %34 = arith.mulf %29, %33 : vector<8x128xf32>
    %c0_12 = arith.constant 0 : index
    %c0_13 = arith.constant 0 : index
    %35 = vector.load %arg2[%c0_12, %c0_13] : memref<8x1xi32, #tpu.memory_space<vmem>>, vector<8x1xi32>
    %36 = vector.broadcast %arg1 : i32 to vector<8x1xi32>
    %37 = arith.cmpi slt, %36, %35 : vector<8x1xi32>
    %38 = vector.shape_cast %37 : vector<8x1xi1> to vector<8x1xi1>
    %39 = vector.broadcast %38 : vector<8x1xi1> to vector<8x128xi1>
    %40 = arith.select %39, %34, %3 : vector<8x128xi1>, vector<8x128xf32>
    %c0_14 = arith.constant 0 : index
    %c0_15 = arith.constant 0 : index
    %41 = vector.load %arg6[%c0_14, %c0_15] : memref<8x128xf32, #tpu.memory_space<vmem>>, vector<8x128xf32>
    tpu.vector_store %arg6[%c0_14, %c0_15], %40 {strides = array<i32>} : memref<8x128xf32, #tpu.memory_space<vmem>>, vector<8x128xf32>,
    %c0_16 = arith.constant 0 : index
    %c0_17 = arith.constant 0 : index
    %42 = vector.load %arg7[%c0_16, %c0_17] : memref<8x128xf32, #tpu.memory_space<vmem>>, vector<8x128xf32>
    tpu.vector_store %arg7[%c0_16, %c0_17], %32 {strides = array<i32>} : memref<8x128xf32, #tpu.memory_space<vmem>>, vector<8x128xf32>,
    %c7_i32 = arith.constant 7 : i32
    %43 = arith.cmpi eq, %arg1, %c7_i32 : i32
    %44 = arith.extui %43 : i1 to i32
    %c0_i32_18 = arith.constant 0 : i32
    %45 = arith.cmpi ne, %44, %c0_i32_18 : i32
    scf.if %45 {
      %c0_19 = arith.constant 0 : index
      %c0_20 = arith.constant 0 : index
      %46 = vector.load %arg5[%c0_19, %c0_20] : memref<8x128xf32, #tpu.memory_space<vmem>>, vector<8x128xf32>
      tpu.vector_store %arg5[%c0_19, %c0_20], %40 {strides = array<i32>} : memref<8x128xf32, #tpu.memory_space<vmem>>, vector<8x128xf32>,
    } else {
    }
    return
  }
  func.func @transform_0(%arg0: i32, %arg1: i32) -> (i32, i32) {
    %c0_i32 = arith.constant 0 : i32
    %c0_i32_0 = arith.constant 0 : i32
    return %arg0, %c0_i32 : i32, i32
  }
  func.func @transform_1(%arg0: i32, %arg1: i32) -> (i32, i32, i32) {
    %c0_i32 = arith.constant 0 : i32
    %c0_i32_0 = arith.constant 0 : i32
    return %arg1, %arg0, %c0_i32 : i32, i32, i32
  }
  func.func @transform_2(%arg0: i32, %arg1: i32) -> (i32, i32) {
    %c0_i32 = arith.constant 0 : i32
    %c0_i32_0 = arith.constant 0 : i32
    %c0_i32_1 = arith.constant 0 : i32
    return %c0_i32, %c0_i32_0 : i32, i32
  }
  func.func @transform_3(%arg0: i32, %arg1: i32) -> (i32, i32) {
    %c0_i32 = arith.constant 0 : i32
    %c0_i32_0 = arith.constant 0 : i32
    return %arg0, %c0_i32 : i32, i32
  }
}

</mosaic_0001>

<bundles_post_ra>
// kernel: lstm_forward.1
= control target key start
LH: loop header
LB: loop body
LE: loop exit
PB: predicated region body
PF: predicated region fallthrough
CT: control target
= control target key end

     0   :  { %s728_s12 = smov 0   ;;  %s730_s13 = smov 0   ;;  %s971_s0 = inlined_call_operand.vmem [shape: s32[8,1], index: 0, kind: input, shape index: {}]   ;;  %s972_s1 = inlined_call_operand.vmem [shape: f32[8,8,512], index: 1, kind: input, shape index: {}]   ;;  %s973_s2 = inlined_call_operand.vmem [shape: f32[128,512], index: 2, kind: input, shape index: {}]   ;;  %s974_s3 = inlined_call_operand.vmem [shape: f32[8,128], index: 3, kind: output, shape index: {}]  }
   0x1   :  { %s732_s14 = smov 0  }
   0x2 LB: > { %s22_s15 = sadd.s32 1, %s699_s13  ;;  %p561_p0 = scmp.ge.s32.totalorder %s703_s14, 1  ;;  %s703_s14 = sphi %s732_s14, %s13_s14   ;;  %s699_s13 = sphi %s730_s13, %s976_s13   ;;  %s695_s12 = sphi %s728_s12, %s975_s12  }
   0x3   : > { %p23_p1 = scmp.ge.s32.totalorder %s22_s15, 8  ;;  %p164_p2 = scmp.lt.s32.totalorder %s703_s14, 9 }
   0x5   : > { %s978_s15 = smov (%p23_p1, %s22_s15), 0  ;;  %p165_p3 = pnand %p561_p0, %p164_p2 }
   0x6   : > { %p199_p4 = scmp.lt.s32.totalorder (!%p165_p3), %s695_s12, 7  ;;  %p564_p5 = scmp.ne.s32.totalorder (!%p165_p3), %s695_s12, 0 }
   0x7   : > { %168 = sbr.rel (%p165_p3) target bundleno = 318 (0x13e), region = 32 }
   0xe   : > { %s200_s16 = scalar_select %p199_p4, %s695_s12, 7 }
   0xf   : > { %215 = sbr.rel (%p564_p5) target bundleno = 22 (0x16), region = 36  ;;  %v705_v0 = vmov (!%p564_p5), 0.0  }
  0x10   : > { %s572_s17 = sshll.u32 %s200_s16, 5  ;;  %216 = vst [vmem:[#allocation2] sm:$0xff] (!%p564_p5), %v705_v0  ;;  %217 = vst [vmem:[#allocation3] sm:$0xff] (!%p564_p5), %v705_v0 }
  0x11   : > { %s753_s20 = scalar_lea.vmem %s972_s1, %s572_s17 }
  0x16 PF: > { %v225_v1 = vld [vmem:[%s973_s2 + $0x8] sm:$0xff]  ;;  %v224_v3 = vld [vmem:[%s973_s2] sm:$0xff]  ;;  %v706_v8 = vmov 0.0   ;;  %v707_v14 = vmov 0   ;;  %v227_v21 = vld [vmem:[%s973_s2 + $0x18] sm:$0xff]  ;;  %p568_p6 = scmp.ne.s32.totalorder %s695_s12, 7 }
  0x17   : > { %v229_v2 = vld [vmem:[%s973_s2 + $0x28] sm:$0xff]  ;;  %v228_v5 = vld [vmem:[%s973_s2 + $0x20] sm:$0xff]  ;;  %352 = vmatprep.mubr.f32.mxu0 %v706_v8  ;;  %423 = vmatprep.mubr.f32.mxu1 %v706_v8  ;;  %v231_v22 = vld [vmem:[%s973_s2 + $0x38] sm:$0xff] }
  0x18   : > { %v573_v4 = vpack.c.bf16 %v229_v2, %v225_v1  ;;  %v233_v6 = vld [vmem:[%s973_s2 + $0x48] sm:$0xff]  ;;  %v575_v9 = vpack.c.bf16 %v228_v5, %v224_v3  ;;  %v232_v11 = vld [vmem:[%s973_s2 + $0x40] sm:$0xff]  ;;  %664 = vset.pattern.permute.xlu0 %v707_v14  ;;  %v605_v24 = vpack.c.bf16 %v231_v22, %v227_v21  ;;  %v226_v25 = vld [vmem:[%s973_s2 + $0x10] sm:$0xff] }
  0x19   : > { %v237_v7 = vld [vmem:[%s973_s2 + $0x68] sm:$0xff]  ;;  %v236_v12 = vld [vmem:[%s973_s2 + $0x60] sm:$0xff]  ;;  %v230_v26 = vld [vmem:[%s973_s2 + $0x30] sm:$0xff] }
  0x1a   : > { %v577_v10 = vpack.c.bf16 %v237_v7, %v233_v6  ;;  %v241_v13 = vld [vmem:[%s973_s2 + $0x88] sm:$0xff]  ;;  %574 = vmatprep.subr.bf16.mxu0 %v573_v4  ;;  %v579_v16 = vpack.c.bf16 %v236_v12, %v232_v11  ;;  %v240_v17 = vld [vmem:[%s973_s2 + $0x80] sm:$0xff]  ;;  %v607_v27 = vpack.c.bf16 %v230_v26, %v226_v25  ;;  %606 = vmatprep.subr.bf16.mxu1 %v605_v24  ;;  %v235_v29 = vld [vmem:[%s973_s2 + $0x58] sm:$0xff]  ;;  %v459_v7 = vstv %s695_s12 }
  0x1b   : > { %v245_v15 = vld [vmem:[%s973_s2 + $0xa8] sm:$0xff]  ;;  %576 = vmatpush1.bf16.msra.mxu0 %v575_v9  ;;  %v244_v18 = vld [vmem:[%s973_s2 + $0xa0] sm:$0xff]  ;;  %v239_v30 = vld [vmem:[%s973_s2 + $0x78] sm:$0xff] }
  0x1c   : > { %578 = vmatprep.subr.bf16.mxu0 %v577_v10  ;;  %v581_v19 = vpack.c.bf16 %v245_v15, %v241_v13  ;;  %v249_v20 = vld [vmem:[%s973_s2 + $0xc8] sm:$0xff]  ;;  %v583_v28 = vpack.c.bf16 %v244_v18, %v240_v17  ;;  %v234_v31 = vld [vmem:[%s973_s2 + $0x50] sm:$0xff]  ;;  %v248_v33 = vld [vmem:[%s973_s2 + $0xc0] sm:$0xff]  ;;  %608 = vmatpush1.bf16.msra.mxu1 %v607_v27  ;;  %v609_v35 = vpack.c.bf16 %v239_v30, %v235_v29 }
  0x1d   : > { %v253_v23 = vld [vmem:[%s973_s2 + $0xe8] sm:$0xff]  ;;  %v252_v34 = vld [vmem:[%s973_s2 + $0xe0] sm:$0xff]  ;;  %v238_v36 = vld [vmem:[%s973_s2 + $0x70] sm:$0xff] }
  0x1e   : > { %v585_v32 = vpack.c.bf16 %v253_v23, %v249_v20  ;;  %v257_v37 = vld [vmem:[%s973_s2 + $0x108] sm:$0xff]  ;;  %v611_v39 = vpack.c.bf16 %v238_v36, %v234_v31  ;;  %v243_v40 = vld [vmem:[%s973_s2 + $0x98] sm:$0xff]  ;;  %610 = vmatprep.subr.bf16.mxu1 %v609_v35  ;;  %v242_v42 = vld [vmem:[%s973_s2 + $0x90] sm:$0xff]  ;;  %v587_v44 = vpack.c.bf16 %v252_v34, %v248_v33 }
  0x1f   : > { %580 = vmatpush1.bf16.msra.mxu0 %v579_v16  ;;  %v261_v38 = vld [vmem:[%s973_s2 + $0x128] sm:$0xff]  ;;  %v247_v41 = vld [vmem:[%s973_s2 + $0xb8] sm:$0xff]  ;;  %v246_v43 = vld [vmem:[%s973_s2 + $0xb0] sm:$0xff] }
  0x20   : > { %582 = vmatprep.subr.bf16.mxu0 %v581_v19  ;;  %v256_v45 = vld [vmem:[%s973_s2 + $0x100] sm:$0xff]  ;;  %v613_v47 = vpack.c.bf16 %v247_v41, %v243_v40  ;;  %v589_v48 = vpack.c.bf16 %v261_v38, %v257_v37  ;;  %612 = vmatpush1.bf16.msra.mxu1 %v611_v39  ;;  %v265_v49 = vld [vmem:[%s973_s2 + $0x148] sm:$0xff]  ;;  %v615_v50 = vpack.c.bf16 %v246_v43, %v242_v42  ;;  %v251_v51 = vld [vmem:[%s973_s2 + $0xd8] sm:$0xff] }
  0x21   : > { %v260_v46 = vld [vmem:[%s973_s2 + $0x120] sm:$0xff]  ;;  %v255_v52 = vld [vmem:[%s973_s2 + $0xf8] sm:$0xff]  ;;  %v269_v53 = vld [vmem:[%s973_s2 + $0x168] sm:$0xff] }
  0x22   : > { %614 = vmatprep.subr.bf16.mxu1 %v613_v47  ;;  %v617_v54 = vpack.c.bf16 %v255_v52, %v251_v51  ;;  %v250_v55 = vld [vmem:[%s973_s2 + $0xd0] sm:$0xff]  ;;  %v591_v57 = vpack.c.bf16 %v260_v46, %v256_v45  ;;  %v259_v58 = vld [vmem:[%s973_s2 + $0x118] sm:$0xff]  ;;  %v593_v60 = vpack.c.bf16 %v269_v53, %v265_v49  ;;  %v264_v61 = vld [vmem:[%s973_s2 + $0x140] sm:$0xff] }
  0x23   : > { %584 = vmatpush1.bf16.msra.mxu0 %v583_v28  ;;  %v254_v56 = vld [vmem:[%s973_s2 + $0xf0] sm:$0xff]  ;;  %v263_v59 = vld [vmem:[%s973_s2 + $0x138] sm:$0xff]  ;;  %v268_v62 = vld [vmem:[%s973_s2 + $0x160] sm:$0xff] }
  0x24   : > { %586 = vmatprep.subr.bf16.mxu0 %v585_v32  ;;  %616 = vmatpush1.bf16.msra.mxu1 %v615_v50  ;;  %v273_v63 = vld [vmem:[%s973_s2 + $0x188] sm:$0xff]  ;;  %v619_v0 = vpack.c.bf16 %v254_v56, %v250_v55  ;;  %v621_v2 = vpack.c.bf16 %v263_v59, %v259_v58  ;;  %v258_v3 = vld [vmem:[%s973_s2 + $0x110] sm:$0xff]  ;;  %v267_v5 = vld [vmem:[%s973_s2 + $0x158] sm:$0xff]  ;;  %v595_v8 = vpack.c.bf16 %v268_v62, %v264_v61 }
  0x25   : > { %v277_v1 = vld [vmem:[%s973_s2 + $0x1a8] sm:$0xff]  ;;  %618 = vmatprep.subr.bf16.mxu1 %v617_v54  ;;  %v262_v4 = vld [vmem:[%s973_s2 + $0x130] sm:$0xff]  ;;  %v271_v6 = vld [vmem:[%s973_s2 + $0x178] sm:$0xff] }
  0x26   : > { %v272_v9 = vld [vmem:[%s973_s2 + $0x180] sm:$0xff]  ;;  %v597_v10 = vpack.c.bf16 %v277_v1, %v273_v63  ;;  %v281_v12 = vld [vmem:[%s973_s2 + $0x1c8] sm:$0xff]  ;;  %v623_v13 = vpack.c.bf16 %v262_v4, %v258_v3  ;;  %v625_v17 = vpack.c.bf16 %v271_v6, %v267_v5  ;;  %v266_v18 = vld [vmem:[%s973_s2 + $0x150] sm:$0xff] }
  0x27   : > { %588 = vmatpush1.bf16.msra.mxu0 %v587_v44  ;;  %v276_v11 = vld [vmem:[%s973_s2 + $0x1a0] sm:$0xff]  ;;  %v285_v16 = vld [vmem:[%s973_s2 + $0x1e8] sm:$0xff]  ;;  %v270_v19 = vld [vmem:[%s973_s2 + $0x170] sm:$0xff] }
  0x28   : > { %590 = vmatprep.subr.bf16.mxu0 %v589_v48  ;;  %620 = vmatpush1.bf16.msra.mxu1 %v619_v0  ;;  %v458_v15 = vld [vmem:[%s971_s0] sm:$0xff]  ;;  %v275_v20 = vld [vmem:[%s973_s2 + $0x198] sm:$0xff]  ;;  %v599_v23 = vpack.c.bf16 %v276_v11, %v272_v9  ;;  %v601_v24 = vpack.c.bf16 %v285_v16, %v281_v12  ;;  %v627_v27 = vpack.c.bf16 %v270_v19, %v266_v18  ;;  %v278_v29 = vld [vmem:[%s973_s2 + $0x1b0] sm:$0xff] }
  0x29   : > { %622 = vmatprep.subr.bf16.mxu1 %v621_v2  ;;  %vm460_vm0 = vcmp.lt.s32.totalorder %v459_v7, %v458_v15  ;;  %v279_v21 = vld [vmem:[%s973_s2 + $0x1b8] sm:$0xff]  ;;  %v280_v25 = vld [vmem:[%s973_s2 + $0x1c0] sm:$0xff]  ;;  %v282_v35 = vld [vmem:[%s973_s2 + $0x1d0] sm:$0xff] }
  0x2a   : > { %v461_v22 = vsel %vm460_vm0, 1, %v707_v14  ;;  %v284_v26 = vld [vmem:[%s973_s2 + $0x1e0] sm:$0xff]  ;;  %v629_v28 = vpack.c.bf16 %v279_v21, %v275_v20  ;;  %v274_v14 = vld [vmem:[%s973_s2 + $0x190] sm:$0xff]  ;;  %v283_v30 = vld [vmem:[%s973_s2 + $0x1d8] sm:$0xff] }
  0x2b   : > { %592 = vmatpush1.bf16.msra.mxu0 %v591_v57  ;;  %463 = vperm.xlu0 %664, %v461_v22   ;;  %v287_v31 = vld [vmem:[%s973_s2 + $0x1f8] sm:$0xff]  ;;  %v603_v32 = vpack.c.bf16 %v284_v26, %v280_v25  ;;  %v631_v33 = vpack.c.bf16 %v278_v29, %v274_v14  ;;  %v286_v36 = vld [vmem:[%s973_s2 + $0x1f0] sm:$0xff]  ;;  %v218_v37 = vld [vmem:[#allocation2] sm:$0xff] }
  0x2c   : > { %594 = vmatprep.subr.bf16.mxu0 %v593_v60  ;;  %624 = vmatpush1.bf16.msra.mxu1 %v623_v13  ;;  %v633_v34 = vpack.c.bf16 %v287_v31, %v283_v30  ;;  %v635_v38 = vpack.c.bf16 %v286_v36, %v282_v35  ;;  %v220_v39 = vld [vmem:[%s753_s20] sm:$0xff]  ;;  %v221_v40 = vld [vmem:[%s753_s20 + $0x8] sm:$0xff]  ;;  %v223_v47 = vld [vmem:[%s753_s20 + $0x18] sm:$0xff] }
  0x2d   : > { %626 = vmatprep.subr.bf16.mxu1 %v625_v17  ;;  %v222_v51 = vld [vmem:[%s753_s20 + $0x10] sm:$0xff]  ;;  %v219_v60 = vld [vmem:[#allocation3] sm:$0xff] }
  0x2f   : > { %596 = vmatpush1.bf16.msra.mxu0 %v595_v8 }
  0x30   : > { %598 = vmatprep.subr.bf16.mxu0 %v597_v10  ;;  %628 = vmatpush1.bf16.msra.mxu1 %v627_v27 }
  0x31   : > { %630 = vmatprep.subr.bf16.mxu1 %v629_v28 }
  0x33   : > { %600 = vmatpush1.bf16.msra.mxu0 %v599_v23 }
  0x34   : > { %602 = vmatprep.subr.bf16.mxu0 %v601_v24  ;;  %632 = vmatpush1.bf16.msra.mxu1 %v631_v33 }
  0x35   : > { %634 = vmatprep.subr.bf16.mxu1 %v633_v34 }
  0x37   : > { %604 = vmatpush1.bf16.msra.mxu0 %v603_v32 }
  0x38   : > { %636 = vmatpush1.bf16.msra.mxu1 %v635_v38 }
  0x3a   : > { %353 = vmatmul.mubr.f32.vlgmr.msra.gmra.mrb[0].mxu0 %v218_v37 }
  0x3b   : > { %424 = vmatmul.mubr.f32.vlgmr.msra.gmra.mrb[0].mxu1 %v218_v37 }
  0xaa   : > { %v464_v3 = vpop.permute.xlu0 %463 }
  0xab   : > { %vm465_vm1 = vcmp.eq.s32.totalorder %v464_v3, 1 }
 0x10d   : > { %v354_v41 = vpop.f32.mrb[0].mxu0 }
 0x10e   : > { %v430_v42 = vadd.f32 %v354_v41, %v220_v39  ;;  %v356_v43 = vpop.f32.mrb[1].mxu0  ;;  %v425_v48 = vpop.f32.mrb[0].mxu1 }
 0x10f   : > { %v431_v44 = vadd.f32 %v356_v43, %v221_v40  ;;  %v427_v49 = vpop.f32.mrb[1].mxu1  ;;  %v432_v53 = vadd.f32 %v425_v48, %v222_v51 }
 0x110   : > { %v565_v45 = vmul.f32 -1.442695, %v430_v42  ;;  %v433_v50 = vadd.f32 %v427_v49, %v223_v47 }
 0x111   : > { %v566_v46 = vmul.f32 -1.442695, %v431_v44 }
 0x112   : > { %665 = vpow2.f32 %v565_v45  ;;  %v567_v52 = vmul.f32 -1.442695, %v433_v50 }
 0x113   : > { %667 = vpow2.f32 %v566_v46 }
 0x114   : > { %669 = vpow2.f32 %v567_v52 }
 0x115   : > { %671 = vtanh.f32 %v432_v53 }
 0x11c   : > { %v666_v54 = vpop.eup %665 }
 0x11d   : > { %v668_v55 = vpop.eup %667  ;;  %v437_v56 = vadd.f32 1.0, %v666_v54 }
 0x11e   : > { %v443_v57 = vadd.f32 1.0, %v668_v55  ;;  %v670_v58 = vpop.eup %669 }
 0x11f   : > { %673 = vrcp.f32 %v437_v56  ;;  %v672_v59 = vpop.eup %671  ;;  %v450_v62 = vadd.f32 1.0, %v670_v58 }
 0x120   : > { %675 = vrcp.f32 %v443_v57 }
 0x121   : > { %677 = vrcp.f32 %v450_v62 }
 0x129   : > { %v674_v61 = vpop.eup %673 }
 0x12a   : > { %v676_v63 = vpop.eup %675  ;;  %v454_v0 = vmul.f32 %v674_v61, %v672_v59 }
 0x12b   : > { %v453_v1 = vmul.f32 %v676_v63, %v219_v60  ;;  %v678_v4 = vpop.eup %677 }
 0x12d   : > { %v455_v2 = vadd.f32 %v454_v0, %v453_v1 }
 0x12f   : > { %679 = vtanh.f32 %v455_v2  ;;  %468 = vst [vmem:[#allocation3] sm:$0xff] %v455_v2 }
 0x137   : > { %472 = sbr.rel (%p568_p6) target bundleno = 318 (0x13e), region = 40 }
 0x139   : > { %v680_v5 = vpop.eup %679 }
 0x13a   : > { %v457_v6 = vmul.f32 %v680_v5, %v678_v4 }
 0x13c   : > { %v466_v7 = vsel %vm465_vm1, %v457_v6, %v218_v37 }
 0x13d   : > { %467 = vst [vmem:[#allocation2] sm:$0xff] %v466_v7  ;;  %473 = vst [vmem:[%s974_s3] sm:$0xff] (!%p568_p6), %v466_v7 }
 0x13e PF: > { %s13_s14 = sadd.s32 1, %s703_s14   ;;  %s975_s12 = smov %s699_s13 }
 0x13f   : > { %p10_p7 = scmp.ge.s32.totalorder %s13_s14, 10   ;;  %s976_s13 = smov %s978_s15 }
 0x141   :  { %12 = sbr.rel (!%p10_p7) target bundleno = 2 (0x2), region = 73 }

</bundles_post_ra>
